<compile_context>
chip_gen: v7x
topology: tpu7x:2x2x1
jax: 0.10.0
libtpu: 0.0.40
codegen_flags: <defaults>
</compile_context>

<pallas_src>
import functools

import jax
import jax.numpy as jnp
from jax.experimental import pallas as pl
from jax.experimental.pallas import tpu as pltpu


_LANE = 128
_MAX_T_HW = 32768          # compile-time sanity cap on the spatial tile


def _round_up(x, m):
    return -(-x // m) * m


def _vmem_capacity_bytes():
    """Per-core VMEM capacity; conservative fallback if the query fails."""
    try:
        info = pltpu.get_tpu_info()
        for name in ("vmem_capacity_bytes", "vmem_size_bytes", "vmem_bytes"):
            cap = getattr(info, name, None)
            if cap:
                return int(cap)
    except Exception:
        pass
    return 64 * 2**20       # v7x per-TensorCore VMEM (smallest of v5e/v6e/v7x)


def _corr_partial_kernel(shift_ref, x_ref, gram_ref, sum_ref, *,
                         hw, t_hw, k_steps, needs_mask, precision):
    """Accumulate shift-stabilized gram + per-lane row sums over spatial tiles.

    shift_ref: (C, 1)     per-channel shift (first pixel), same for all tiles
    x_ref:     (C, T_HW)  spatial tile
    gram_ref:  (C, C)     f32 partial gram accumulator (output-resident)
    sum_ref:   (C, 128)   f32 per-lane partial row sums (output-resident)
    """
    k = pl.program_id(2)

    @pl.when(k == 0)
    def _init():
        gram_ref[...] = jnp.zeros_like(gram_ref)
        sum_ref[...] = jnp.zeros_like(sum_ref)

    xs = x_ref[...] - shift_ref[...]                        # (C, T_HW)

    if needs_mask:
        # Ragged last tile / overflow tiles of the split: zero invalid lanes.
        g = pl.program_id(0) * k_steps + k                  # global spatial tile
        valid = hw - g * t_hw                               # may be <= 0
        lane = jax.lax.broadcasted_iota(jnp.int32, xs.shape, 1)
        xs = jnp.where(lane < valid, xs, 0.0)

    # Gram contracted on the spatial (last) axis of BOTH operands: feeds the
    # MXU directly, no transposed copy of xs is materialized.
    gram_ref[...] += jax.lax.dot_general(
        xs, xs,
        dimension_numbers=(((1,), (1,)), ((), ())),
        preferred_element_type=jnp.float32,
        precision=precision,
    )

    # Row sums without a per-step cross-lane reduce: accumulate 128-lane
    # partials with pure vreg adds; the single lane reduce is in the epilogue.
    if t_hw % _LANE == 0:
        ps = xs[:, 0:_LANE]
        for gidx in range(1, t_hw // _LANE):
            ps = ps + xs[:, gidx * _LANE:(gidx + 1) * _LANE]
        sum_ref[...] += ps
    else:
        # Single-step path only (t_hw == hw, not 128-aligned): one reduce total.
        col = jnp.sum(xs, axis=1, keepdims=True)            # (C, 1)
        lane = jax.lax.broadcasted_iota(jnp.int32, sum_ref.shape, 1)
        sum_ref[...] += jnp.where(lane == 0, col, 0.0)


def correlation_model(image, *, block_lanes=None, precision=None):
    """image: [B, C, H, W] float -> [B, C, C] float32 channel correlation."""
    B, C, H, W = image.shape
    hw = H * W

    x = image.reshape(B, C, hw).astype(jnp.float32)
    # Per-channel shift (first pixel): cheap (B,C,1) slice, identical for all
    # tiles/splits so the shifted partial grams/sums combine exactly.
    shift = x[:, :, 0:1]

    cap = _vmem_capacity_bytes()
    if block_lanes is None:
        # Target a double-buffered input pair of ~cap/2 (32 MiB v7x,
        # 64 MiB v5e/v6e); _MAX_T_HW only bounds compile-time unrolling.
        max_lanes = (cap // 2) // (2 * C * 4)
        max_lanes = max(_LANE, min(_MAX_T_HW, (max_lanes // _LANE) * _LANE))
    else:
        max_lanes = max(_LANE, (int(block_lanes) // _LANE) * _LANE)

    if hw <= max_lanes:
        t_hw, num_k = hw, 1        # full spatial extent: exempt from 128 rule
    else:
        t_hw, num_k = max_lanes, pl.cdiv(hw, max_lanes)

    # Megacore (v7x): when B == 1 the batch axis cannot feed both TensorCores,
    # so split the spatial reduction in two.  Harmless on single-TC chips.
    if B == 1 and num_k == 1 and hw > _LANE:
        t_hw = _round_up(pl.cdiv(hw, 2), _LANE)
        num_k = pl.cdiv(hw, t_hw)
    n_split = 2 if (B == 1 and num_k >= 2) else 1
    k_steps = pl.cdiv(num_k, n_split)

    needs_mask = (num_k * t_hw != hw) or (n_split * k_steps != num_k)

    if precision is None:
        # HIGHEST (~6 bf16 MXU passes) is free while HBM-bound; once C is
        # large enough to be MXU-bound (roughly C>~80 v5e / 100 v7x / 250 v6e)
        # HIGH halves MXU time at modest accuracy cost.
        precision = (jax.lax.Precision.HIGHEST if C <= 112
                     else jax.lax.Precision.HIGH)

    kernel = functools.partial(
        _corr_partial_kernel, hw=hw, t_hw=t_hw, k_steps=k_steps,
        needs_mask=needs_mask, precision=precision)

    def x_map(s, b, k):
        # Clamp overflow tiles of the split onto the last real tile (their
        # contribution is masked to zero in-kernel); keeps all DMAs in bounds.
        return (b, 0, jnp.minimum(s * k_steps + k, num_k - 1))

    in_bytes = 2 * C * t_hw * 4 + 2 * C * 4            # double-buffered inputs
    out_bytes = 2 * (C * C + C * _LANE) * 4
    need = int(1.25 * (in_bytes + out_bytes)) + (4 << 20)
    upper = min(cap - (16 << 20), 100 << 20)           # ~48 MiB v7x / ~100 MiB v5e,v6e
    vmem_limit = int(min(upper, max(32 << 20, need)))

    gram_p, sum_p = pl.pallas_call(
        kernel,
        out_shape=(jax.ShapeDtypeStruct((n_split, B, C, C), jnp.float32),
                   jax.ShapeDtypeStruct((n_split, B, C, _LANE), jnp.float32)),
        grid_spec=pltpu.PrefetchScalarGridSpec(
            num_scalar_prefetch=0,
            grid=(n_split, B, k_steps),
            in_specs=[
                pl.BlockSpec((None, C, 1), lambda s, b, k: (b, 0, 0)),
                pl.BlockSpec((None, C, t_hw), x_map),
            ],
            out_specs=(
                pl.BlockSpec((None, None, C, C), lambda s, b, k: (s, b, 0, 0)),
                pl.BlockSpec((None, None, C, _LANE), lambda s, b, k: (s, b, 0, 0)),
            ),
        ),
        compiler_params=pltpu.CompilerParams(
            dimension_semantics=("parallel", "parallel", "arbitrary"),
            vmem_limit_bytes=vmem_limit,
        ),
        cost_estimate=pl.CostEstimate(
            flops=2 * B * C * C * hw,
            transcendentals=0,
            bytes_accessed=B * C * hw * 4
                           + n_split * B * (C * C + C * _LANE) * 4,
        ),
    )(shift, x)

    # Tiny O(B*C^2) epilogue: combine split partials, un-shift, normalize.
    g = jnp.sum(gram_p, axis=0)                          # (B, C, C)
    s = jnp.sum(sum_p, axis=(0, 3))                      # (B, C)
    cov = g - (s[:, :, None] * s[:, None, :]) * (1.0 / hw)
    # rsqrt(0) -> NaN for constant channels; matches the reference's 0/0.
    inv = jax.lax.rsqrt(jnp.diagonal(cov, axis1=1, axis2=2))
    return cov * inv[:, :, None] * inv[:, None, :]


def _reference(image):
    # Pure-JAX mirror of the PyTorch forward (torch.std is unbiased -> n-1).
    n = image.shape[2] * image.shape[3]
    mean = jnp.mean(image, axis=(2, 3), keepdims=True)
    var = jnp.sum((image - mean) ** 2, axis=(2, 3), keepdims=True) / (n - 1)
    std = jnp.sqrt(var)
    img = (image - mean) / (std + 1e-8)
    flat = img.reshape(img.shape[0], img.shape[1], -1)
    corr = jnp.einsum("bcn,bdn->bcd", flat, flat,
                      precision=jax.lax.Precision.HIGHEST)
    mag = jnp.sqrt(jnp.sum(flat ** 2, axis=2))
    return corr / mag[:, :, None] / mag[:, None, :]


if __name__ == "__main__":
    key = jax.random.PRNGKey(0)
    k1, k2 = jax.random.split(key)

    # Case 1: nominal small shape — single-step path, batch parallel axis.
    B, C, H, W = 2, 4, 16, 16
    img1 = jax.random.normal(k1, (B, C, H, W), dtype=jnp.float32)
    out1 = jax.block_until_ready(correlation_model(img1))
    ref1 = _reference(img1)
    assert out1.shape == (B, C, C)
    assert jnp.allclose(out1, ref1, atol=1e-4, rtol=1e-4), "case 1 mismatch"

    # Case 2: B=1, non-128-aligned HW, forced small tiles — exercises the
    # megacore split, overflow-tile clamp, ragged-tile mask and the
    # shift-stabilized accumulation (|mean| >> std).
    img2 = 100.0 + 5.0 * jax.random.normal(k2, (1, 4, 17, 19), dtype=jnp.float32)
    out2 = jax.block_until_ready(correlation_model(img2, block_lanes=128))
    ref2 = _reference(img2)
    assert out2.shape == (1, 4, 4)
    assert jnp.allclose(out2, ref2, atol=2e-4, rtol=2e-4), "case 2 mismatch"

    print("KERNEL_OK")
</pallas_src>

<mosaic_0001>
module attributes {stable_mosaic.version = 11 : i64} {
  func.func @_corr_partial_kernel(%arg0: i32, %arg1: i32, %arg2: i32, %arg3: memref<1x4x1xf32, #tpu.memory_space<vmem>>, %arg4: memref<1x4x256xf32, #tpu.memory_space<vmem>>, %arg5: memref<1x1x4x4xf32, #tpu.memory_space<vmem>>, %arg6: memref<1x1x4x128xf32, #tpu.memory_space<vmem>>) attributes {dimension_semantics = [#tpu.dimension_semantics<parallel>, #tpu.dimension_semantics<parallel>, #tpu.dimension_semantics<arbitrary>], iteration_bounds = array<i64: 1, 2, 1>, scalar_prefetch = 0 : i64, scratch_operands = 0 : i64, tpu.core_type = #tpu.core_type<tc>, window_params = [{transform_indices = @transform_0, window_bounds = array<i64: 1, 4, 1>}, {transform_indices = @transform_1, window_bounds = array<i64: 1, 4, 256>}, {transform_indices = @transform_2, window_bounds = array<i64: 1, 1, 4, 4>}, {transform_indices = @transform_3, window_bounds = array<i64: 1, 1, 4, 128>}]} {
    %c0_i32 = arith.constant 0 : i32
    %0 = arith.cmpi eq, %arg2, %c0_i32 : i32
    %1 = arith.extui %0 : i1 to i32
    %c0_i32_0 = arith.constant 0 : i32
    %2 = arith.cmpi ne, %1, %c0_i32_0 : i32
    scf.if %2 {
      %cst_22 = arith.constant 0.000000e+00 : f32
      %25 = vector.broadcast %cst_22 : f32 to vector<4x4xf32>
      %c0_23 = arith.constant 0 : index
      %c0_24 = arith.constant 0 : index
      %c0_25 = arith.constant 0 : index
      %c0_26 = arith.constant 0 : index
      %26 = vector.load %arg5[%c0_23, %c0_24, %c0_25, %c0_26] : memref<1x1x4x4xf32, #tpu.memory_space<vmem>>, vector<1x1x4x4xf32>
      %27 = vector.shape_cast %26 : vector<1x1x4x4xf32> to vector<4x4xf32>
      %28 = vector.shape_cast %25 : vector<4x4xf32> to vector<1x1x4x4xf32>
      tpu.vector_store %arg5[%c0_23, %c0_24, %c0_25, %c0_26], %28 {strides = array<i32>} : memref<1x1x4x4xf32, #tpu.memory_space<vmem>>, vector<1x1x4x4xf32>,
      %cst_27 = arith.constant 0.000000e+00 : f32
      %29 = vector.broadcast %cst_27 : f32 to vector<4x128xf32>
      %c0_28 = arith.constant 0 : index
      %c0_29 = arith.constant 0 : index
      %c0_30 = arith.constant 0 : index
      %c0_31 = arith.constant 0 : index
      %30 = vector.load %arg6[%c0_28, %c0_29, %c0_30, %c0_31] : memref<1x1x4x128xf32, #tpu.memory_space<vmem>>, vector<1x1x4x128xf32>
      %31 = vector.shape_cast %30 : vector<1x1x4x128xf32> to vector<4x128xf32>
      %32 = vector.shape_cast %29 : vector<4x128xf32> to vector<1x1x4x128xf32>
      tpu.vector_store %arg6[%c0_28, %c0_29, %c0_30, %c0_31], %32 {strides = array<i32>} : memref<1x1x4x128xf32, #tpu.memory_space<vmem>>, vector<1x1x4x128xf32>,
    } else {
    }
    %c0 = arith.constant 0 : index
    %c0_1 = arith.constant 0 : index
    %c0_2 = arith.constant 0 : index
    %3 = vector.load %arg4[%c0, %c0_1, %c0_2] : memref<1x4x256xf32, #tpu.memory_space<vmem>>, vector<1x4x256xf32>
    %4 = vector.shape_cast %3 : vector<1x4x256xf32> to vector<4x256xf32>
    %c0_3 = arith.constant 0 : index
    %c0_4 = arith.constant 0 : index
    %c0_5 = arith.constant 0 : index
    %5 = vector.load %arg3[%c0_3, %c0_4, %c0_5] : memref<1x4x1xf32, #tpu.memory_space<vmem>>, vector<1x4x1xf32>
    %6 = vector.shape_cast %5 : vector<1x4x1xf32> to vector<4x1xf32>
    %7 = vector.broadcast %6 : vector<4x1xf32> to vector<4x256xf32>
    %8 = arith.subf %4, %7 : vector<4x256xf32>
    %c0_6 = arith.constant 0 : index
    %c0_7 = arith.constant 0 : index
    %c0_8 = arith.constant 0 : index
    %c0_9 = arith.constant 0 : index
    %9 = vector.load %arg5[%c0_6, %c0_7, %c0_8, %c0_9] : memref<1x1x4x4xf32, #tpu.memory_space<vmem>>, vector<1x1x4x4xf32>
    %10 = vector.shape_cast %9 : vector<1x1x4x4xf32> to vector<4x4xf32>
    %cst = arith.constant dense<0.000000e+00> : vector<4x4xf32>
    %11 = tpu.matmul %8, %8, %cst {dimension_numbers = #tpu.dot_dimension_numbers<[1], [1], [0], [0], [0, 0, 1, 0], [], []>, precision = #tpu.contract_precision<fp32>} : vector<4x256xf32>, vector<4x256xf32>, vector<4x4xf32> -> vector<4x4xf32>
    %12 = arith.addf %10, %11 : vector<4x4xf32>
    %c0_10 = arith.constant 0 : index
    %c0_11 = arith.constant 0 : index
    %c0_12 = arith.constant 0 : index
    %c0_13 = arith.constant 0 : index
    %13 = vector.load %arg5[%c0_10, %c0_11, %c0_12, %c0_13] : memref<1x1x4x4xf32, #tpu.memory_space<vmem>>, vector<1x1x4x4xf32>
    %14 = vector.shape_cast %13 : vector<1x1x4x4xf32> to vector<4x4xf32>
    %15 = vector.shape_cast %12 : vector<4x4xf32> to vector<1x1x4x4xf32>
    tpu.vector_store %arg5[%c0_10, %c0_11, %c0_12, %c0_13], %15 {strides = array<i32>} : memref<1x1x4x4xf32, #tpu.memory_space<vmem>>, vector<1x1x4x4xf32>,
    %16 = vector.extract_strided_slice %8 {offsets = [0, 0], sizes = [4, 128], strides = [1, 1]} : vector<4x256xf32> to vector<4x128xf32>
    %17 = vector.extract_strided_slice %8 {offsets = [0, 128], sizes = [4, 128], strides = [1, 1]} : vector<4x256xf32> to vector<4x128xf32>
    %18 = arith.addf %16, %17 : vector<4x128xf32>
    %c0_14 = arith.constant 0 : index
    %c0_15 = arith.constant 0 : index
    %c0_16 = arith.constant 0 : index
    %c0_17 = arith.constant 0 : index
    %19 = vector.load %arg6[%c0_14, %c0_15, %c0_16, %c0_17] : memref<1x1x4x128xf32, #tpu.memory_space<vmem>>, vector<1x1x4x128xf32>
    %20 = vector.shape_cast %19 : vector<1x1x4x128xf32> to vector<4x128xf32>
    %21 = arith.addf %20, %18 : vector<4x128xf32>
    %c0_18 = arith.constant 0 : index
    %c0_19 = arith.constant 0 : index
    %c0_20 = arith.constant 0 : index
    %c0_21 = arith.constant 0 : index
    %22 = vector.load %arg6[%c0_18, %c0_19, %c0_20, %c0_21] : memref<1x1x4x128xf32, #tpu.memory_space<vmem>>, vector<1x1x4x128xf32>
    %23 = vector.shape_cast %22 : vector<1x1x4x128xf32> to vector<4x128xf32>
    %24 = vector.shape_cast %21 : vector<4x128xf32> to vector<1x1x4x128xf32>
    tpu.vector_store %arg6[%c0_18, %c0_19, %c0_20, %c0_21], %24 {strides = array<i32>} : memref<1x1x4x128xf32, #tpu.memory_space<vmem>>, vector<1x1x4x128xf32>,
    return
  }
  func.func @transform_0(%arg0: i32, %arg1: i32, %arg2: i32) -> (i32, i32, i32) {
    %c0_i32 = arith.constant 0 : i32
    %c0_i32_0 = arith.constant 0 : i32
    %c0_i32_1 = arith.constant 0 : i32
    return %arg1, %c0_i32, %c0_i32_0 : i32, i32, i32
  }
  func.func @transform_1(%arg0: i32, %arg1: i32, %arg2: i32) -> (i32, i32, i32) {
    %c1_i32 = arith.constant 1 : i32
    %0 = arith.muli %arg0, %c1_i32 : i32
    %1 = arith.addi %0, %arg2 : i32
    %c0_i32 = arith.constant 0 : i32
    %2 = arith.minsi %1, %c0_i32 : i32
    %c0_i32_0 = arith.constant 0 : i32
    %c0_i32_1 = arith.constant 0 : i32
    return %arg1, %c0_i32_0, %2 : i32, i32, i32
  }
  func.func @transform_2(%arg0: i32, %arg1: i32, %arg2: i32) -> (i32, i32, i32, i32) {
    %c0_i32 = arith.constant 0 : i32
    %c0_i32_0 = arith.constant 0 : i32
    %c0_i32_1 = arith.constant 0 : i32
    return %arg0, %arg1, %c0_i32, %c0_i32_0 : i32, i32, i32, i32
  }
  func.func @transform_3(%arg0: i32, %arg1: i32, %arg2: i32) -> (i32, i32, i32, i32) {
    %c0_i32 = arith.constant 0 : i32
    %c0_i32_0 = arith.constant 0 : i32
    %c0_i32_1 = arith.constant 0 : i32
    return %arg0, %arg1, %c0_i32, %c0_i32_0 : i32, i32, i32, i32
  }
}

</mosaic_0001>

<bundles_post_ra>
// kernel: tpu_custom_call.1
= control target key start
LH: loop header
LB: loop body
LE: loop exit
PB: predicated region body
PF: predicated region fallthrough
CT: control target
= control target key end

     0   :  { %9 = vsyncpa [#allocation3], 0  ;;  %s1415_s0 = inlined_call_operand.vmem [shape: f32[2,4,1], index: 0, kind: input, shape index: {}]   ;;  %s1416_s1 = inlined_call_operand.hbm [shape: f32[2,4,256], index: 1, kind: input, shape index: {}]   ;;  %s1417_s2 = inlined_call_operand.hbm [shape: f32[1,2,4,4], index: 2, kind: output, shape index: {0}]   ;;  %s1418_s3 = inlined_call_operand.hbm [shape: f32[1,2,4,128], index: 3, kind: output, shape index: {1}]  }
   0x1   :  { %11 = vsyncpa [#allocation3 + $0x1], 0 }
   0x2   :  { %12 = vsyncpa [#allocation4], 0 }
   0x3   :  { %14 = vsyncpa [#allocation4 + $0x1], 0 }
   0x4   :  { %15 = vsyncpa [#allocation7], 0 }
   0x5   :  { %17 = vsyncpa [#allocation7 + $0x1], 0  ;;  %s1192_s12 = smov 0   ;;  %s1194_s13 = smov 0  }
   0x6   :  { %s1196_s14 = smov 0   ;;  %s1198_s15 = smov 0  }
   0x7   :  { %s1200_s16 = smov 0   ;;  %s1202_s17 = smov 0  }
   0x8 LB: > { %s930_s18 = sadd.s32 4294967295, %s1164_s17   ;;  %s931_s19 = sadd.s32 4294967294, %s1164_s17   ;;  %s1164_s17 = sphi %s1202_s17, %s23_s17   ;;  %s1160_s16 = sphi %s1200_s16, %s1434_s16   ;;  %s1156_s15 = sphi %s1198_s15, %s1433_s15   ;;  %s1152_s14 = sphi %s1196_s14, %s1432_s14   ;;  %s1148_s13 = sphi %s1194_s13, %s1431_s13   ;;  %s1144_s12 = sphi %s1192_s12, %s1430_s12  }
   0x9   : > { %s38_s20 = sadd.s32 1, %s1160_s16  ;;  %s83_s21 = sadd.s32 1, %s1152_s14 }
   0xa   : > { %p40_p0 = scmp.ge.s32.totalorder %s38_s20, 2  ;;  %p90_p1 = scmp.ne.s32.totalorder %s1152_s14, %s1148_s13 }
   0xb   : > { %p91_p2 = scmp.eq.s32.totalorder %s1164_s17, 0  ;;  %p96_p3 = scmp.ne.s32.totalorder %s1148_s13, %s1144_s12 }
   0xc   : > { %s1436_s20 = smov (%p40_p0, %s38_s20), 0  ;;  %p97_p5 = scmp.eq.s32.totalorder %s930_s18, 0 }
   0xd   : > { %p1233_p4 = por %p91_p2, %p90_p1  ;;  %s78_s23 = ssub.s32 %s1160_s16, %s1436_s20 }
   0xe   : > { %p122_p6 = scmp.eq.s32.totalorder %s930_s18, 1  ;;  %p81_p7 = scmp.eq.s32.totalorder %s78_s23, 0 }
   0xf   : > { %p1239_p8 = por %p97_p5, %p96_p3  ;;  %p128_p10 = scmp.eq.s32.totalorder %s931_s19, 1 }
  0x10   : > { %p1243_p9 = por %p122_p6, %p90_p1  ;;  %p966_p13 = scmp.lt.s32.totalorder %s1164_s17, 2 }
  0x11   : > { %s1248_s26 = scalar_select %p81_p7, %s1152_s14, %s83_s21  }
  0x12   : > { %s1422_s25 = scalar_select %p1243_p9, 1, 0 }
  0x13   : > { %p1250_p11 = por %p128_p10, %p96_p3  ;;  %s183_s28 = sand.u32 1, %s1152_s14  }
  0x14   : > { %s934_s29 = sshll.u32 %s183_s28, 3  ;;  %s948_s30 = sshll.u32 %s1160_s16, 7 }
  0x15   : > { %s1423_s27 = scalar_select %p1250_p11, 1, 0 }
  0x16   : > { %s1261_s6 = scalar_lea.hbm %s1416_s1, %s948_s30  ;;  %s187_s7 = scalar_lea.vmem [#allocation2], %s934_s29 }
  0x17   : > { %s200_s8 = sshll.u32 %s187_s7, 4  ;;  %p1267_p0 = pnand %p966_p13, %p1233_p4  ;;  %s1263_s8 = int_to_ptr.vmem [resolvable:$true] %s200_s8 }
  0x18   : > { %s184_s10 = scalar_lea.sflag [#allocation3], %s183_s28  ;;  %s1020_s11 = scalar_lea.hbm %s1261_s6, 128 }
  0x19   : > { %p1021_p3 = scmp.ne.s32.totalorder %s1261_s6, %s1020_s11  ;;  %p1022_p5 = pneg %p1267_p0 }
  0x1a   : > { %s1025_s21 = scalar_lea.hbm %s1416_s1, 256  ;;  %p1026_p4 = scmp.lt.u32.totalorder %s1261_s6, %s1416_s1 }
  0x1b   : > { %p1023_p6 = pnand %p1022_p5, %p1021_p3  ;;  %p1027_p10 = scmp.lt.u32.totalorder %s1025_s21, %s1020_s11 }
  0x1c   : > { %p1029_p12 = scmp.lt.u32.totalorder %s1020_s11, %s1261_s6 }
  0x1d   : > { %p1024_p7 = pneg %p1023_p6  ;;  %p1028_p13 = por %p1027_p10, %p1026_p4 }
  0x1f   : > { %p1030_p1 = por %p1029_p12, %p1028_p13 }
  0x21   : > { %p1031_p2 = pnand %p1030_p1, %p1024_p7 }
  0x23   : > { %1034 = shalt.err (!%p1031_p2)
}
  0x24   : > { %s1035_s28 = scalar_lea.vmem %s1263_s8, 128  ;;  %s1166_s29 = smov [#allocation2]  }
  0x25   : > { %p1036_p3 = scmp.ne.s32.totalorder %s1263_s8, %s1035_s28  ;;  %s1040_s30 = sshll.u32 %s1166_s29, 4  ;;  %s1041_s30 = int_to_ptr.vmem [resolvable:$false] %s1040_s30 }
  0x26   : > { %s1042_s4 = scalar_lea.vmem %s1041_s30, 256  ;;  %p1043_p9 = scmp.lt.s32.totalorder %s1263_s8, %s1041_s30 }
  0x27   : > { %p1038_p6 = pnand %p1036_p3, %p1022_p5  ;;  %p1044_p4 = scmp.lt.s32.totalorder %s1042_s4, %s1035_s28 }
  0x29   : > { %p1039_p11 = pneg %p1038_p6  ;;  %p1045_p10 = por %p1044_p4, %p1043_p9 }
  0x2b   : > { %p1046_p12 = pnand %p1045_p10, %p1039_p11 }
  0x2d   : > { %1049 = shalt.err (!%p1046_p12)
}
  0x2e   : > { %958 = dma.hbm_to_vmem [thread:$0]  (!%p1267_p0), %s1261_s6, 128, %s1263_s8, %s184_s10  }
  0x2f   : > { %p1425_p1 = scmp.lt.s32.totalorder %s1164_s17, 3  ;;  %p1426_p2 = scmp.ge.s32.totalorder %s1164_s17, 1 }
  0x31   : > { %p206_p5 = pnand %p1426_p2, %p1425_p1 }
  0x32   : > { %s1303_s5 = sand.u32 (!%p206_p5), 1, %s1148_s13  }
  0x33   : > { %209 = sbr.rel (%p206_p5) target bundleno = 452 (0x1c4), region = 28  ;;  %s938_s7 = sshll.u32 (!%p206_p5), %s1303_s5, 3 }
  0x34   : > { %s212_s11 = scalar_lea.sflag (!%p206_p5), [#allocation3], %s1303_s5  ;;  %s215_s18 = scalar_lea.vmem (!%p206_p5), [#allocation2], %s938_s7 }
  0x3a   : > { %1131 = dma.done.wait (%p1239_p8), %s212_s11, 128  }
  0x3b   : > { %1133 = vsyncadd (%p1239_p8), %s212_s11, 4294967168  ;;  %p247_p9 = scmp.lt.s32.totalorder %s1156_s15, 1  ;;  %v1167_v0 = vmov 0   ;;  %s939_s21 = sshll.u32 %s1303_s5, 2  ;;  %v1168_v2 = vmov 0.0   ;;  %v271_v5 = vlaneseq  ;;  %v262_v10 = vld [vmem:[%s215_s18] sm:$0xff] }
  0x3c   : > { %1019 = vset.pattern.permute.xlu0 %v1167_v0  ;;  %s1319_s22 = scalar_lea.vmem [#allocation6], %s939_s21  ;;  %v1169_v3 = vmov 839922192   ;;  %vm259_vm0 = vcmask 27648   ;;  %s1326_s24 = scalar_lea.vmem [#allocation5], %s939_s21 }
  0x3d   : > { %s248_s6 = scalar_select %p247_p9, %s1156_s15, 1  ;;  %261 = vst [vmem:[%s1319_s22] sm:$0xf] %v1168_v2  ;;  %v269_v4 = vunpack.c.l.s4 %v1169_v3  ;;  %v272_v7 = vshrl.u32 %v271_v5, 7  ;;  %260 = vst.msk [vmem:[%s1326_s24] sm:$0xf] %vm259_vm0, %v1168_v2 }
  0x3e   : > { %s944_s23 = sshll.u32 %s1156_s15, 6  ;;  %s798_s4 = sshll.u32 %s1319_s22, 4  ;;  %s799_s4 = int_to_ptr.vmem [resolvable:$true] %s798_s4 }
  0x3f   : > { %s941_s8 = sshll.u32 %s248_s6, 2  ;;  %v270_v6 = vunpack.c.0.s8 %v269_v4  ;;  %s1336_s30 = scalar_lea.hbm %s1418_s3, %s944_s23 }
  0x40   : > { %s250_s19 = scalar_lea.vmem %s1415_s0, %s941_s8  ;;  %s768_s7 = scalar_lea.sflag [#allocation7], %s1303_s5 }
  0x41   : > { %v263_v1 = vld [vmem:[%s250_s19] sm:$0xf]  ;;  %v273_v8 = vsub.s32 %v270_v6, %v272_v7  ;;  %s1050_s11 = scalar_lea.vmem %s799_s4, 64  ;;  %p1427_p11 = scmp.ne.s32.totalorder %s1422_s25, 0 }
  0x42   : > { %266 = vperm.xlu0 %1019, %v263_v1   ;;  %p1051_p8 = scmp.ne.s32.totalorder %s799_s4, %s1050_s11  ;;  %s1170_s18 = smov [#allocation6]  }
  0x43   : > { %s1054_s6 = sshll.u32 %s1170_s18, 4  ;;  %s1055_s6 = int_to_ptr.vmem [resolvable:$false] %s1054_s6 }
  0x44   : > { %v759_v16 = vld [vmem:[%s1319_s22] sm:$0xf]  ;;  %p1052_p0 = pnand %p1051_p8, %p1427_p11  ;;  %s1056_s8 = scalar_lea.vmem %s1055_s6, 128 }
  0x45   : > { %p1057_p13 = scmp.lt.s32.totalorder %s799_s4, %s1055_s6  ;;  %p1058_p3 = scmp.lt.s32.totalorder %s1056_s8, %s1050_s11 }
  0x46   : > { %p1053_p7 = pneg %p1052_p0 }
  0x47   : > { %p1059_p6 = por %p1058_p3, %p1057_p13 }
  0x49   : > { %p1060_p4 = pnand %p1059_p6, %p1053_p7 }
  0xc1   : > { %v267_v9 = vpop.permute.xlu0 %266 }
  0xc2   : > { %v274_v11 = vrot.slane %v267_v9, %v273_v8 }
  0xc4   : > { %v276_v12 = vsub.f32 %v262_v10, %v274_v11 }
  0xc6   : > { %v279_v13 = vcombine.high %v276_v12, %v276_v12  ;;  %v283_v14 = vand.u32 4294901760, %v276_v12  ;;  %v756_v15 = vrot.slane %v276_v12, 4 }
  0xc8   : > { %v281_v17 = vand.u32 4294901760, %v279_v13  ;;  %v354_v18 = vsub.f32 %v276_v12, %v283_v14  ;;  %v758_v19 = vadd.f32 %v756_v15, %v276_v12 }
  0xca   : > { %282 = vmatprep.subr.mxu0 %v281_v17  ;;  %438 = vmatprep.mubr.f32.mxu1 %v281_v17  ;;  %v348_v20 = vsub.f32 %v279_v13, %v281_v17  ;;  %v355_v21 = vand.u32 4294901760, %v354_v18  ;;  %v760_v22 = vadd.f32 %v759_v16, %v758_v19 }
  0xcb   : > { %284 = vmatpush1.xpose.msra.mxu0 %v283_v14 }
  0xcc   : > { %447 = vmatprep.subr.mxu0 %v348_v20  ;;  %v349_v23 = vand.u32 4294901760, %v348_v20  ;;  %761 = vst [vmem:[%s1319_s22] sm:$0xf] %v760_v22  ;;  %v356_v24 = vsub.f32 %v354_v18, %v355_v21 }
  0xce   : > { %v350_v25 = vsub.f32 %v348_v20, %v349_v23  ;;  %v357_v27 = vand.u32 4294901760, %v356_v24 }
  0xd0   : > { %v351_v26 = vand.u32 4294901760, %v350_v25 }
  0xd2   : > { %352 = vmatprep.mubr.f32.mxu0 %v351_v26  ;;  %368 = vmatprep.subr.mxu1 %v351_v26 }
  0xd3   : > { %358 = vmatmul.mubr.f32.vlgmr.msra.gmra.mrb[0].mxu0 %v357_v27  ;;  %374 = vmatpush1.xpose.msra.mxu1 %v357_v27 }
  0xd4   : > { %450 = vmatpush1.xpose.msra.mxu0 %v354_v18  ;;  %515 = vmatprep.mubr.f32.mxu0 %v348_v20 }
  0xd5   : > { %524 = vmatprep.subr.mxu1 %v281_v17  ;;  %604 = vmatprep.subr.mxu0 %v349_v23 }
  0xd6   : > { %440 = vmatmul.mubr.f32.vlgmr.msra.gmra.mrb[0].mxu1 %v283_v14 }
  0xd7   : > { %518 = vmatmul.mubr.f32.vlgmr.msra.gmra.mrb[2].mxu0 %v354_v18  ;;  %526 = vmatpush1.xpose.msra.mxu1 %v283_v14 }
  0xd8   : > { %592 = vmatprep.mubr.f32.mxu1 %v349_v23  ;;  %608 = vmatpush1.xpose.msra.mxu0 %v355_v21 }
  0xd9   : > { %672 = vmatprep.mubr.f32.mxu0 %v281_v17  ;;  %680 = vmatprep.subr.mxu1 %v281_v17 }
  0xda   : > { %596 = vmatmul.mubr.f32.vlgmr.msra.gmra.mrb[2].mxu1 %v355_v21 }
  0xdb   : > { %674 = vmatmul.mubr.f32.vlgmr.msra.gmra.mrb[4].mxu0 %v283_v14  ;;  %682 = vmatpush1.xpose.msra.mxu1 %v283_v14 }
  0xdc   : > { %746 = vmatprep.mubr.f32.mxu1 %v281_v17 }
  0xde   : > { %748 = vmatmul.mubr.f32.vlgmr.msra.gmra.mrb[4].mxu1 %v283_v14 }
  0xdf   : > { %1063 = shalt.err (!%p1060_p4)
}
  0xe0   : > { %s1064_s9 = scalar_lea.hbm %s1336_s30, 64  ;;  %s1068_s21 = scalar_lea.hbm %s1418_s3, 128 }
  0xe1   : > { %p1065_p10 = scmp.ne.s32.totalorder %s1336_s30, %s1064_s9  ;;  %p1069_p2 = scmp.lt.u32.totalorder %s1336_s30, %s1418_s3 }
  0xe2   : > { %p1070_p5 = scmp.lt.u32.totalorder %s1068_s21, %s1064_s9  ;;  %p1072_p8 = scmp.lt.u32.totalorder %s1064_s9, %s1336_s30 }
  0xe3   : > { %p1066_p12 = pnand %p1065_p10, %p1427_p11 }
  0xe4   : > { %p1071_p9 = por %p1070_p5, %p1069_p2 }
  0xe5   : > { %p1067_p1 = pneg %p1066_p12 }
  0xe6   : > { %p1073_p0 = por %p1072_p8, %p1071_p9 }
  0xe8   : > { %p1074_p7 = pnand %p1073_p0, %p1067_p1 }
  0xea   : > { %1077 = shalt.err (!%p1074_p7)
}
  0xeb   : > { %952 = dma.vmem_to_hbm [thread:$0]  (%p1427_p11), %s799_s4, 64, %s1336_s30, %s768_s7   ;;  %v277_v42 = vld [vmem:[%s1326_s24] sm:$0xf] }
  0xec   : > { %s783_s29 = sshll.u32 %s1326_s24, 4  ;;  %s1364_s7 = scalar_lea.hbm %s1417_s2, %s944_s23  ;;  %s1366_s29 = int_to_ptr.vmem [resolvable:$true] %s783_s29 }
  0xed   : > { %s763_s11 = scalar_lea.sflag [#allocation4], %s1303_s5  ;;  %s1078_s18 = scalar_lea.vmem %s1366_s29, 64 }
  0xee   : > { %p1079_p13 = scmp.ne.s32.totalorder %s1366_s29, %s1078_s18  ;;  %s1171_s6 = smov [#allocation5]  }
  0xef   : > { %s1082_s15 = sshll.u32 %s1171_s6, 4  ;;  %s1083_s15 = int_to_ptr.vmem [resolvable:$false] %s1082_s15 }
  0xf0   : > { %p1080_p3 = pnand %p1079_p13, %p1427_p11  ;;  %s1084_s8 = scalar_lea.vmem %s1083_s15, 128 }
  0xf1   : > { %p1085_p4 = scmp.lt.s32.totalorder %s1366_s29, %s1083_s15  ;;  %p1086_p10 = scmp.lt.s32.totalorder %s1084_s8, %s1078_s18 }
  0xf2   : > { %p1081_p6 = pneg %p1080_p3 }
  0xf3   : > { %p1087_p12 = por %p1086_p10, %p1085_p4 }
  0xf5   : > { %p1088_p1 = pnand %p1087_p12, %p1081_p6 }
 0x1a6   : > { %v359_v28 = vpop.f32.mrb[0].mxu0 }
 0x1a7   : > { %v361_v29 = vpop.f32.mrb[1].mxu0 }
 0x1a9   : > { %v441_v30 = vpop.f32.mrb[0].mxu1 }
 0x1aa   : > { %v442_v31 = vadd.f32 %v441_v30, %v359_v28  ;;  %v443_v32 = vpop.f32.mrb[1].mxu1  ;;  %v519_v33 = vpop.f32.mrb[2].mxu0 }
 0x1ab   : > { %v521_v34 = vpop.f32.mrb[3].mxu0 }
 0x1ac   : > { %v520_v35 = vadd.f32 %v519_v33, %v442_v31 }
 0x1ad   : > { %v597_v36 = vpop.f32.mrb[2].mxu1 }
 0x1ae   : > { %v598_v37 = vadd.f32 %v597_v36, %v520_v35  ;;  %v599_v38 = vpop.f32.mrb[3].mxu1  ;;  %v675_v39 = vpop.f32.mrb[4].mxu0 }
 0x1af   : > { %v677_v40 = vpop.f32.mrb[5].mxu0 }
 0x1b0   : > { %v676_v41 = vadd.f32 %v675_v39, %v598_v37 }
 0x1b1   : > { %v749_v43 = vpop.f32.mrb[4].mxu1 }
 0x1b2   : > { %v750_v44 = vadd.f32 %v749_v43, %v676_v41  ;;  %v751_v45 = vpop.f32.mrb[5].mxu1 }
 0x1b4   : > { %v753_v46 = vadd.f32 %v750_v44, %v277_v42 }
 0x1b6   : > { %755 = vst.msk [vmem:[%s1326_s24] sm:$0xf] %vm259_vm0, %v753_v46 }
 0x1b7   : > { %1091 = shalt.err (!%p1088_p1)
}
 0x1b8   : > { %s1092_s5 = scalar_lea.hbm %s1364_s7, 64  ;;  %s1096_s9 = scalar_lea.hbm %s1417_s2, 128 }
 0x1b9   : > { %p1093_p2 = scmp.ne.s32.totalorder %s1364_s7, %s1092_s5  ;;  %p1097_p8 = scmp.lt.u32.totalorder %s1364_s7, %s1417_s2 }
 0x1ba   : > { %p1098_p0 = scmp.lt.u32.totalorder %s1096_s9, %s1092_s5  ;;  %p1100_p13 = scmp.lt.u32.totalorder %s1092_s5, %s1364_s7 }
 0x1bb   : > { %p1094_p5 = pnand %p1093_p2, %p1427_p11 }
 0x1bc   : > { %p1099_p7 = por %p1098_p0, %p1097_p8 }
 0x1bd   : > { %p1095_p9 = pneg %p1094_p5 }
 0x1be   : > { %p1101_p3 = por %p1100_p13, %p1099_p7 }
 0x1c0   : > { %p1102_p6 = pnand %p1101_p3, %p1095_p9 }
 0x1c2   : > { %1105 = shalt.err (!%p1102_p6)
}
 0x1c3   : > { %951 = dma.vmem_to_hbm [thread:$0]  (%p1427_p11), %s1366_s29, 64, %s1364_s7, %s763_s11  }
 0x1c4 PF: > { %s810_s21 = sand.u32 1, %s1144_s12   ;;  %p1428_p4 = scmp.ne.s32.totalorder %s1423_s27, 0 }
 0x1c5   : > { %p1429_p10 = scmp.ge.s32.totalorder %s1164_s17, 2  ;;  %s811_s22 = scalar_lea.sflag [#allocation4], %s810_s21 }
 0x1c7   : > { %p960_p12 = pnand %p1429_p10, %p1428_p4 }
 0x1c9   : > { %1135 = dma.done.wait (!%p960_p12), %s811_s22, 64  }
 0x1ca   : > { %1137 = vsyncadd (!%p960_p12), %s811_s22, 4294967232  ;;  %s820_s28 = scalar_lea.sflag [#allocation7], %s810_s21 }
 0x1cb   : > { %1139 = dma.done.wait (!%p960_p12), %s820_s28, 64  }
 0x1cc   : > { %1141 = vsyncadd (!%p960_p12), %s820_s28, 4294967232  ;;  %s23_s17 = sadd.s32 1, %s1164_s17   ;;  %s1430_s12 = smov %s1148_s13 }
 0x1cd   : > { %p20_p1 = scmp.ge.s32.totalorder %s23_s17, 4   ;;  %s1431_s13 = smov %s1152_s14 }
 0x1ce   : > { %s1432_s14 = smov %s1248_s26  ;;  %s1433_s15 = smov %s1160_s16 }
 0x1cf   : > { %s1434_s16 = smov %s1436_s20  ;;  %22 = sbr.rel (!%p20_p1) target bundleno = 8 (0x8), region = 97 }
 0x1d6   :  { %825 = vsyncpa [#allocation3], 1 }
 0x1d7   :  { %827 = vsyncpa [#allocation3 + $0x1], 1 }
 0x1d8   :  { %828 = vsyncpa [#allocation4], 1 }
 0x1d9   :  { %830 = vsyncpa [#allocation4 + $0x1], 1 }
 0x1da   :  { %831 = vsyncpa [#allocation7], 1 }
 0x1db   :  { %833 = vsyncpa [#allocation7 + $0x1], 1 }

</bundles_post_ra>
